<compile_context>
chip_gen: v7x
topology: tpu7x:2x2x1
jax: 0.10.0
libtpu: 0.0.40
codegen_flags: <defaults>
</compile_context>

<pallas_src>
import functools

import jax
import jax.numpy as jnp
from jax.experimental import pallas as pl
from jax.experimental.pallas import tpu as pltpu

EPS = 1e-5
_VMEM_LIMIT = 48 * 1024 * 1024  # safe on v5e/v6e (128 MiB) and v7x (64 MiB)


def _pick_hw_tile(hw: int, cap: int = 2048) -> int:
    """Largest multiple-of-128 divisor of hw that is <= cap; else hw itself."""
    best = 0
    t = 128
    while t <= min(hw, cap):
        if hw % t == 0:
            best = t
        t += 128
    return best if best > 0 else hw


# ----------------------------------------------------------------------------
# Kernel 1: BatchNorm2d batch statistics (training-mode, biased variance).
# Grid (N, HW//T); x block (1, C, T); outputs (C, 1) accumulate in-place.
# ----------------------------------------------------------------------------
def bn_stats_kernel(x_ref, mean_ref, var_ref, *, inv_count):
    first = (pl.program_id(0) == 0) & (pl.program_id(1) == 0)

    @pl.when(first)
    def _():
        mean_ref[...] = jnp.zeros_like(mean_ref)
        var_ref[...] = jnp.zeros_like(var_ref)

    x = x_ref[0]                                        # (C, T)
    # Accumulate first and second moments in f32 (outputs stay VMEM-resident
    # because their block index is constant across the grid).
    # NOTE: single-pass E[x^2] - E[x]^2 can lose precision for inputs with a
    # very large mean offset; activations here are zero-ish mean so f32 is fine.
    mean_ref[...] += jnp.sum(x, axis=1, keepdims=True)
    var_ref[...] += jnp.sum(x * x, axis=1, keepdims=True)

    last = ((pl.program_id(0) == pl.num_programs(0) - 1)
            & (pl.program_id(1) == pl.num_programs(1) - 1))

    @pl.when(last)
    def _():
        m = mean_ref[...] * inv_count                   # E[x]
        ex2 = var_ref[...] * inv_count                  # E[x^2]
        mean_ref[...] = m
        var_ref[...] = ex2 - m * m                      # biased var (PyTorch BN)


# ----------------------------------------------------------------------------
# Kernel 2: fused denormalization on a (C, T_HW) channels-first tile.
# ----------------------------------------------------------------------------
def denorm_kernel(
    x_ref,       # (1, C, T)   input feature tile
    st_ref,      # (1, Cs, T)  structure tile
    scale_ref,   # (C, 1)   folded BN scale  = gamma / sqrt(var + eps)
    shift_ref,   # (C, 1)   folded BN shift  = beta - mean * scale
    wst_ref,     # (2C, Cs) fused structure_mu / structure_sigma 1x1-conv weights
    bsmu_ref,    # (C, 1)
    bssig_ref,   # (C, 1)
    stymu_ref,   # (1, C, 1)  per-batch style_mu(style)
    stysig_ref,  # (1, C, 1)  per-batch style_sigma(style)
    wmask_ref,   # (C, 1)   input_mask 1x1-conv weight (per-channel scalars)
    bmask_ref,   # (1, 1)
    out_ref,     # (1, C, T)
):
    C = scale_ref.shape[0]

    # BatchNorm2d (stats pre-folded into scale/shift in the wrapper).
    xn = x_ref[0] * scale_ref[...] + shift_ref[...]                   # (C, T)

    # Structure branch: one fused MXU push -> (2C, T) lane-dense result.
    st = st_ref[0]                                                    # (Cs, T)
    sm = jnp.dot(wst_ref[...], st, preferred_element_type=jnp.float32)
    s_mu = sm[:C] + bsmu_ref[...]
    s_sig = sm[C:] + bssig_ref[...]
    structure_act = s_mu + s_sig * xn                                 # (C, T)

    # Style branch: per-batch per-channel scalars broadcast over the tile.
    style_act = stymu_ref[0] + stysig_ref[0] * xn                     # (C, T)

    # Spatial mask: per-channel weighted sum (sublane reduction, no MXU N=1).
    mask_logit = jnp.sum(xn * wmask_ref[...], axis=0, keepdims=True) \
        + bmask_ref[...]                                              # (1, T)
    mask = jax.nn.sigmoid(mask_logit)

    out_ref[0] = (1.0 - mask) * structure_act + mask * style_act


# ----------------------------------------------------------------------------
# Wrapper: layout plumbing (pure reshapes, no transposes) + pallas_call setup.
# ----------------------------------------------------------------------------
@jax.jit
def denormalization_forward(x_nchw, st_nchw, style, params):
    N, C, H, W = x_nchw.shape
    Cs = st_nchw.shape[1]
    HW = H * W
    f32 = jnp.float32

    x = x_nchw.reshape(N, C, HW).astype(f32)
    st = st_nchw.reshape(N, Cs, HW).astype(f32)

    T = _pick_hw_tile(HW)
    num_t = HW // T

    # --- kernel 1: tiled batch statistics ---
    stats_kernel = functools.partial(bn_stats_kernel,
                                     inv_count=1.0 / float(N * HW))
    mean, var = pl.pallas_call(
        stats_kernel,
        grid=(N, num_t),
        out_shape=(jax.ShapeDtypeStruct((C, 1), f32),
                   jax.ShapeDtypeStruct((C, 1), f32)),
        in_specs=[pl.BlockSpec((1, C, T), lambda n, h: (n, 0, h))],
        out_specs=(pl.BlockSpec((C, 1), lambda n, h: (0, 0)),
                   pl.BlockSpec((C, 1), lambda n, h: (0, 0))),
        compiler_params=pltpu.CompilerParams(
            dimension_semantics=("arbitrary", "arbitrary"),
            vmem_limit_bytes=_VMEM_LIMIT),
        cost_estimate=pl.CostEstimate(
            flops=3 * N * HW * C,
            transcendentals=0,
            bytes_accessed=4 * (N * HW * C + 2 * C)),
    )(x)

    # Fold BN stats + affine into a single per-channel scale/shift.
    gamma = params["gamma"].reshape(C, 1).astype(f32)
    beta = params["beta"].reshape(C, 1).astype(f32)
    scale = gamma * jax.lax.rsqrt(var + EPS)               # (C, 1)
    shift = beta - mean * scale                            # (C, 1)

    # Structure 1x1-conv weights, fused (mu ; sigma) -> (2C, Cs).
    w_struct = jnp.concatenate(
        [params["w_smu"].T, params["w_ssig"].T], axis=0).astype(f32)
    b_smu = params["b_smu"].reshape(C, 1).astype(f32)
    b_ssig = params["b_ssig"].reshape(C, 1).astype(f32)

    # Style Linears hoisted out of the kernel: one batched matmul for all N.
    sty = style.astype(f32)
    sty_mu = (sty @ params["w_stymu"].astype(f32)
              + params["b_stymu"].astype(f32)).reshape(N, C, 1)
    sty_sig = (sty @ params["w_stysig"].astype(f32)
               + params["b_stysig"].astype(f32)).reshape(N, C, 1)

    w_mask = params["w_mask"].reshape(C, 1).astype(f32)
    b_mask = params["b_mask"].reshape(1, 1).astype(f32)

    def _const(shape):
        nd = len(shape)
        return pl.BlockSpec(shape, lambda n, h, _nd=nd: (0,) * _nd)

    # --- kernel 2: fused denormalization, tiled over (batch, HW) ---
    out = pl.pallas_call(
        denorm_kernel,
        grid=(N, num_t),
        out_shape=jax.ShapeDtypeStruct((N, C, HW), f32),
        in_specs=[
            pl.BlockSpec((1, C, T), lambda n, h: (n, 0, h)),    # x
            pl.BlockSpec((1, Cs, T), lambda n, h: (n, 0, h)),   # structure
            _const((C, 1)),                                     # scale
            _const((C, 1)),                                     # shift
            _const((2 * C, Cs)),                                # w_struct
            _const((C, 1)),                                     # b_smu
            _const((C, 1)),                                     # b_ssig
            pl.BlockSpec((1, C, 1), lambda n, h: (n, 0, 0)),    # sty_mu
            pl.BlockSpec((1, C, 1), lambda n, h: (n, 0, 0)),    # sty_sig
            _const((C, 1)),                                     # w_mask
            _const((1, 1)),                                     # b_mask
        ],
        out_specs=pl.BlockSpec((1, C, T), lambda n, h: (n, 0, h)),
        compiler_params=pltpu.CompilerParams(
            dimension_semantics=("parallel", "parallel"),
            vmem_limit_bytes=_VMEM_LIMIT),
        cost_estimate=pl.CostEstimate(
            flops=N * HW * (2 * Cs * 2 * C + 12 * C + 4),
            transcendentals=N * HW,
            bytes_accessed=4 * N * HW * (2 * C + Cs)),
    )(x, st, scale, shift, w_struct, b_smu, b_ssig,
      sty_mu, sty_sig, w_mask, b_mask)

    return out.reshape(N, C, H, W)


# ----------------------------------------------------------------------------
# Pure-JAX reference (NCHW, mirrors the PyTorch forward in training mode).
# ----------------------------------------------------------------------------
def reference_forward(x, st, sty, p):
    mean = jnp.mean(x, axis=(0, 2, 3), keepdims=True)
    var = jnp.mean((x - mean) ** 2, axis=(0, 2, 3), keepdims=True)
    xn = ((x - mean) / jnp.sqrt(var + EPS)
          * p["gamma"][None, :, None, None] + p["beta"][None, :, None, None])

    s_mu = jnp.einsum("nchw,cd->ndhw", st, p["w_smu"]) + p["b_smu"][None, :, None, None]
    s_sig = jnp.einsum("nchw,cd->ndhw", st, p["w_ssig"]) + p["b_ssig"][None, :, None, None]
    structure_act = s_mu + s_sig * xn

    sty_mu = (sty @ p["w_stymu"] + p["b_stymu"])[:, :, None, None]
    sty_sig = (sty @ p["w_stysig"] + p["b_stysig"])[:, :, None, None]
    style_act = sty_mu + sty_sig * xn

    mask = jax.nn.sigmoid(
        jnp.einsum("nchw,co->nohw", xn, p["w_mask"]) + p["b_mask"][None, :, None, None])
    return (1.0 - mask) * structure_act + mask * style_act


if __name__ == "__main__":
    # Small, forward-consistent shapes.
    N, C, Cs, Csty, H, W = 2, 4, 3, 8, 16, 16

    key = jax.random.PRNGKey(0)
    ks = jax.random.split(key, 16)

    x = jax.random.normal(ks[0], (N, C, H, W), jnp.float32)
    structure = jax.random.normal(ks[1], (N, Cs, H, W), jnp.float32)
    style = jax.random.normal(ks[2], (N, Csty), jnp.float32)

    # Synthetic parameters (shapes follow the PyTorch module; conv/linear
    # weights stored pre-transposed as (Cin, Cout)).
    params = {
        "gamma":    1.0 + 0.1 * jax.random.normal(ks[3], (C,), jnp.float32),
        "beta":     0.1 * jax.random.normal(ks[4], (C,), jnp.float32),
        "w_smu":    0.2 * jax.random.normal(ks[5], (Cs, C), jnp.float32),
        "b_smu":    0.1 * jax.random.normal(ks[6], (C,), jnp.float32),
        "w_ssig":   0.2 * jax.random.normal(ks[7], (Cs, C), jnp.float32),
        "b_ssig":   0.1 * jax.random.normal(ks[8], (C,), jnp.float32),
        "w_stymu":  0.2 * jax.random.normal(ks[9], (Csty, C), jnp.float32),
        "b_stymu":  0.1 * jax.random.normal(ks[10], (C,), jnp.float32),
        "w_stysig": 0.2 * jax.random.normal(ks[11], (Csty, C), jnp.float32),
        "b_stysig": 0.1 * jax.random.normal(ks[12], (C,), jnp.float32),
        "w_mask":   0.2 * jax.random.normal(ks[13], (C, 1), jnp.float32),
        "b_mask":   0.1 * jax.random.normal(ks[14], (1,), jnp.float32),
    }

    out = denormalization_forward(x, structure, style, params)
    out = jax.block_until_ready(out)

    ref = reference_forward(x, structure, style, params)
    assert out.shape == (N, C, H, W)
    assert jnp.allclose(out, ref, rtol=1e-3, atol=1e-3), (
        float(jnp.max(jnp.abs(out - ref))))

    print("KERNEL_OK")
</pallas_src>

<mosaic_0001>
module attributes {stable_mosaic.version = 11 : i64} {
  func.func @bn_stats_kernel(%arg0: i32, %arg1: i32, %arg2: memref<1x4x256xf32, #tpu.memory_space<vmem>>, %arg3: memref<4x1xf32, #tpu.memory_space<vmem>>, %arg4: memref<4x1xf32, #tpu.memory_space<vmem>>) attributes {dimension_semantics = [#tpu.dimension_semantics<arbitrary>, #tpu.dimension_semantics<arbitrary>], iteration_bounds = array<i64: 2, 1>, scalar_prefetch = 0 : i64, scratch_operands = 0 : i64, tpu.core_type = #tpu.core_type<tc>, window_params = [{transform_indices = @transform_0, window_bounds = array<i64: 1, 4, 256>}, {pipeline_mode = #tpu.pipeline_mode<synchronous>, transform_indices = @transform_1, window_bounds = array<i64: 4, 1>}, {pipeline_mode = #tpu.pipeline_mode<synchronous>, transform_indices = @transform_2, window_bounds = array<i64: 4, 1>}]} {
    %c0_i32 = arith.constant 0 : i32
    %0 = arith.cmpi eq, %arg0, %c0_i32 : i32
    %c0_i32_0 = arith.constant 0 : i32
    %1 = arith.cmpi eq, %arg1, %c0_i32_0 : i32
    %2 = arith.andi %0, %1 : i1
    %3 = arith.extui %2 : i1 to i32
    %c0_i32_1 = arith.constant 0 : i32
    %4 = arith.cmpi ne, %3, %c0_i32_1 : i32
    scf.if %4 {
      %cst_15 = arith.constant 0.000000e+00 : f32
      %23 = vector.broadcast %cst_15 : f32 to vector<4x1xf32>
      %c0_16 = arith.constant 0 : index
      %c0_17 = arith.constant 0 : index
      %24 = vector.load %arg3[%c0_16, %c0_17] : memref<4x1xf32, #tpu.memory_space<vmem>>, vector<4x1xf32>
      tpu.vector_store %arg3[%c0_16, %c0_17], %23 {strides = array<i32>} : memref<4x1xf32, #tpu.memory_space<vmem>>, vector<4x1xf32>,
      %cst_18 = arith.constant 0.000000e+00 : f32
      %25 = vector.broadcast %cst_18 : f32 to vector<4x1xf32>
      %c0_19 = arith.constant 0 : index
      %c0_20 = arith.constant 0 : index
      %26 = vector.load %arg4[%c0_19, %c0_20] : memref<4x1xf32, #tpu.memory_space<vmem>>, vector<4x1xf32>
      tpu.vector_store %arg4[%c0_19, %c0_20], %25 {strides = array<i32>} : memref<4x1xf32, #tpu.memory_space<vmem>>, vector<4x1xf32>,
    } else {
    }
    %c0 = arith.constant 0 : index
    %c0_2 = arith.constant 0 : index
    %c0_3 = arith.constant 0 : index
    %5 = vector.load %arg2[%c0, %c0_2, %c0_3] : memref<1x4x256xf32, #tpu.memory_space<vmem>>, vector<1x4x256xf32>
    %6 = vector.shape_cast %5 : vector<1x4x256xf32> to vector<4x256xf32>
    %c0_4 = arith.constant 0 : index
    %c0_5 = arith.constant 0 : index
    %7 = vector.load %arg3[%c0_4, %c0_5] : memref<4x1xf32, #tpu.memory_space<vmem>>, vector<4x1xf32>
    %cst = arith.constant dense<0.000000e+00> : vector<4xf32>
    %8 = vector.multi_reduction <add>, %6, %cst [1] : vector<4x256xf32> to vector<4xf32>
    %9 = vector.shape_cast %8 : vector<4xf32> to vector<4x1xf32>
    %10 = arith.addf %7, %9 : vector<4x1xf32>
    %c0_6 = arith.constant 0 : index
    %c0_7 = arith.constant 0 : index
    %11 = vector.load %arg3[%c0_6, %c0_7] : memref<4x1xf32, #tpu.memory_space<vmem>>, vector<4x1xf32>
    tpu.vector_store %arg3[%c0_6, %c0_7], %10 {strides = array<i32>} : memref<4x1xf32, #tpu.memory_space<vmem>>, vector<4x1xf32>,
    %c0_8 = arith.constant 0 : index
    %c0_9 = arith.constant 0 : index
    %12 = vector.load %arg4[%c0_8, %c0_9] : memref<4x1xf32, #tpu.memory_space<vmem>>, vector<4x1xf32>
    %13 = arith.mulf %6, %6 : vector<4x256xf32>
    %cst_10 = arith.constant dense<0.000000e+00> : vector<4xf32>
    %14 = vector.multi_reduction <add>, %13, %cst_10 [1] : vector<4x256xf32> to vector<4xf32>
    %15 = vector.shape_cast %14 : vector<4xf32> to vector<4x1xf32>
    %16 = arith.addf %12, %15 : vector<4x1xf32>
    %c0_11 = arith.constant 0 : index
    %c0_12 = arith.constant 0 : index
    %17 = vector.load %arg4[%c0_11, %c0_12] : memref<4x1xf32, #tpu.memory_space<vmem>>, vector<4x1xf32>
    tpu.vector_store %arg4[%c0_11, %c0_12], %16 {strides = array<i32>} : memref<4x1xf32, #tpu.memory_space<vmem>>, vector<4x1xf32>,
    %c1_i32 = arith.constant 1 : i32
    %18 = arith.cmpi eq, %arg0, %c1_i32 : i32
    %c0_i32_13 = arith.constant 0 : i32
    %19 = arith.cmpi eq, %arg1, %c0_i32_13 : i32
    %20 = arith.andi %18, %19 : i1
    %21 = arith.extui %20 : i1 to i32
    %c0_i32_14 = arith.constant 0 : i32
    %22 = arith.cmpi ne, %21, %c0_i32_14 : i32
    scf.if %22 {
      %c0_15 = arith.constant 0 : index
      %c0_16 = arith.constant 0 : index
      %23 = vector.load %arg3[%c0_15, %c0_16] : memref<4x1xf32, #tpu.memory_space<vmem>>, vector<4x1xf32>
      %cst_17 = arith.constant 0.001953125 : f32
      %24 = vector.broadcast %cst_17 : f32 to vector<4x1xf32>
      %25 = arith.mulf %23, %24 : vector<4x1xf32>
      %c0_18 = arith.constant 0 : index
      %c0_19 = arith.constant 0 : index
      %26 = vector.load %arg4[%c0_18, %c0_19] : memref<4x1xf32, #tpu.memory_space<vmem>>, vector<4x1xf32>
      %cst_20 = arith.constant 0.001953125 : f32
      %27 = vector.broadcast %cst_20 : f32 to vector<4x1xf32>
      %28 = arith.mulf %26, %27 : vector<4x1xf32>
      %c0_21 = arith.constant 0 : index
      %c0_22 = arith.constant 0 : index
      %29 = vector.load %arg3[%c0_21, %c0_22] : memref<4x1xf32, #tpu.memory_space<vmem>>, vector<4x1xf32>
      tpu.vector_store %arg3[%c0_21, %c0_22], %25 {strides = array<i32>} : memref<4x1xf32, #tpu.memory_space<vmem>>, vector<4x1xf32>,
      %30 = arith.mulf %25, %25 : vector<4x1xf32>
      %31 = arith.subf %28, %30 : vector<4x1xf32>
      %c0_23 = arith.constant 0 : index
      %c0_24 = arith.constant 0 : index
      %32 = vector.load %arg4[%c0_23, %c0_24] : memref<4x1xf32, #tpu.memory_space<vmem>>, vector<4x1xf32>
      tpu.vector_store %arg4[%c0_23, %c0_24], %31 {strides = array<i32>} : memref<4x1xf32, #tpu.memory_space<vmem>>, vector<4x1xf32>,
    } else {
    }
    return
  }
  func.func @transform_0(%arg0: i32, %arg1: i32) -> (i32, i32, i32) {
    %c0_i32 = arith.constant 0 : i32
    %c0_i32_0 = arith.constant 0 : i32
    return %arg0, %c0_i32, %arg1 : i32, i32, i32
  }
  func.func @transform_1(%arg0: i32, %arg1: i32) -> (i32, i32) {
    %c0_i32 = arith.constant 0 : i32
    %c0_i32_0 = arith.constant 0 : i32
    %c0_i32_1 = arith.constant 0 : i32
    return %c0_i32, %c0_i32_0 : i32, i32
  }
  func.func @transform_2(%arg0: i32, %arg1: i32) -> (i32, i32) {
    %c0_i32 = arith.constant 0 : i32
    %c0_i32_0 = arith.constant 0 : i32
    %c0_i32_1 = arith.constant 0 : i32
    return %c0_i32, %c0_i32_0 : i32, i32
  }
}

module attributes {stable_mosaic.version = 11 : i64} {
  func.func @denorm_kernel(%arg0: i32, %arg1: i32, %arg2: memref<1x4x256xf32, #tpu.memory_space<vmem>>, %arg3: memref<1x3x256xf32, #tpu.memory_space<vmem>>, %arg4: memref<4x1xf32, #tpu.memory_space<vmem>>, %arg5: memref<4x1xf32, #tpu.memory_space<vmem>>, %arg6: memref<8x3xf32, #tpu.memory_space<vmem>>, %arg7: memref<4x1xf32, #tpu.memory_space<vmem>>, %arg8: memref<4x1xf32, #tpu.memory_space<vmem>>, %arg9: memref<1x4x1xf32, #tpu.memory_space<vmem>>, %arg10: memref<1x4x1xf32, #tpu.memory_space<vmem>>, %arg11: memref<4x1xf32, #tpu.memory_space<vmem>>, %arg12: memref<1x1xf32, #tpu.memory_space<vmem>>, %arg13: memref<1x4x256xf32, #tpu.memory_space<vmem>>) attributes {dimension_semantics = [#tpu.dimension_semantics<parallel>, #tpu.dimension_semantics<parallel>], iteration_bounds = array<i64: 2, 1>, scalar_prefetch = 0 : i64, scratch_operands = 0 : i64, tpu.core_type = #tpu.core_type<tc>, window_params = [{transform_indices = @transform_0, window_bounds = array<i64: 1, 4, 256>}, {transform_indices = @transform_1, window_bounds = array<i64: 1, 3, 256>}, {pipeline_mode = #tpu.pipeline_mode<synchronous>, transform_indices = @transform_2, window_bounds = array<i64: 4, 1>}, {pipeline_mode = #tpu.pipeline_mode<synchronous>, transform_indices = @transform_3, window_bounds = array<i64: 4, 1>}, {pipeline_mode = #tpu.pipeline_mode<synchronous>, transform_indices = @transform_4, window_bounds = array<i64: 8, 3>}, {pipeline_mode = #tpu.pipeline_mode<synchronous>, transform_indices = @transform_5, window_bounds = array<i64: 4, 1>}, {pipeline_mode = #tpu.pipeline_mode<synchronous>, transform_indices = @transform_6, window_bounds = array<i64: 4, 1>}, {transform_indices = @transform_7, window_bounds = array<i64: 1, 4, 1>}, {transform_indices = @transform_8, window_bounds = array<i64: 1, 4, 1>}, {pipeline_mode = #tpu.pipeline_mode<synchronous>, transform_indices = @transform_9, window_bounds = array<i64: 4, 1>}, {pipeline_mode = #tpu.pipeline_mode<synchronous>, transform_indices = @transform_10, window_bounds = array<i64: 1, 1>}, {transform_indices = @transform_11, window_bounds = array<i64: 1, 4, 256>}]} {
    %c0 = arith.constant 0 : index
    %c0_0 = arith.constant 0 : index
    %c0_1 = arith.constant 0 : index
    %0 = vector.load %arg2[%c0, %c0_0, %c0_1] : memref<1x4x256xf32, #tpu.memory_space<vmem>>, vector<1x4x256xf32>
    %1 = vector.shape_cast %0 : vector<1x4x256xf32> to vector<4x256xf32>
    %c0_2 = arith.constant 0 : index
    %c0_3 = arith.constant 0 : index
    %2 = vector.load %arg4[%c0_2, %c0_3] : memref<4x1xf32, #tpu.memory_space<vmem>>, vector<4x1xf32>
    %3 = vector.broadcast %2 : vector<4x1xf32> to vector<4x256xf32>
    %4 = arith.mulf %1, %3 : vector<4x256xf32>
    %c0_4 = arith.constant 0 : index
    %c0_5 = arith.constant 0 : index
    %5 = vector.load %arg5[%c0_4, %c0_5] : memref<4x1xf32, #tpu.memory_space<vmem>>, vector<4x1xf32>
    %6 = vector.broadcast %5 : vector<4x1xf32> to vector<4x256xf32>
    %7 = arith.addf %4, %6 : vector<4x256xf32>
    %c0_6 = arith.constant 0 : index
    %c0_7 = arith.constant 0 : index
    %c0_8 = arith.constant 0 : index
    %8 = vector.load %arg3[%c0_6, %c0_7, %c0_8] : memref<1x3x256xf32, #tpu.memory_space<vmem>>, vector<1x3x256xf32>
    %9 = vector.shape_cast %8 : vector<1x3x256xf32> to vector<3x256xf32>
    %c0_9 = arith.constant 0 : index
    %c0_10 = arith.constant 0 : index
    %10 = vector.load %arg6[%c0_9, %c0_10] : memref<8x3xf32, #tpu.memory_space<vmem>>, vector<8x3xf32>
    %cst = arith.constant dense<0.000000e+00> : vector<8x256xf32>
    %11 = tpu.matmul %10, %9, %cst {dimension_numbers = #tpu.dot_dimension_numbers<[1], [0], [0], [1], [0, 0, 1, 1], [], []>} : vector<8x3xf32>, vector<3x256xf32>, vector<8x256xf32> -> vector<8x256xf32>
    %12 = vector.extract_strided_slice %11 {offsets = [0, 0], sizes = [4, 256], strides = [1, 1]} : vector<8x256xf32> to vector<4x256xf32>
    %c0_11 = arith.constant 0 : index
    %c0_12 = arith.constant 0 : index
    %13 = vector.load %arg7[%c0_11, %c0_12] : memref<4x1xf32, #tpu.memory_space<vmem>>, vector<4x1xf32>
    %14 = vector.broadcast %13 : vector<4x1xf32> to vector<4x256xf32>
    %15 = arith.addf %12, %14 : vector<4x256xf32>
    %16 = vector.extract_strided_slice %11 {offsets = [4, 0], sizes = [4, 256], strides = [1, 1]} : vector<8x256xf32> to vector<4x256xf32>
    %c0_13 = arith.constant 0 : index
    %c0_14 = arith.constant 0 : index
    %17 = vector.load %arg8[%c0_13, %c0_14] : memref<4x1xf32, #tpu.memory_space<vmem>>, vector<4x1xf32>
    %18 = vector.broadcast %17 : vector<4x1xf32> to vector<4x256xf32>
    %19 = arith.addf %16, %18 : vector<4x256xf32>
    %20 = arith.mulf %19, %7 : vector<4x256xf32>
    %21 = arith.addf %15, %20 : vector<4x256xf32>
    %c0_15 = arith.constant 0 : index
    %c0_16 = arith.constant 0 : index
    %c0_17 = arith.constant 0 : index
    %22 = vector.load %arg9[%c0_15, %c0_16, %c0_17] : memref<1x4x1xf32, #tpu.memory_space<vmem>>, vector<1x4x1xf32>
    %23 = vector.shape_cast %22 : vector<1x4x1xf32> to vector<4x1xf32>
    %c0_18 = arith.constant 0 : index
    %c0_19 = arith.constant 0 : index
    %c0_20 = arith.constant 0 : index
    %24 = vector.load %arg10[%c0_18, %c0_19, %c0_20] : memref<1x4x1xf32, #tpu.memory_space<vmem>>, vector<1x4x1xf32>
    %25 = vector.shape_cast %24 : vector<1x4x1xf32> to vector<4x1xf32>
    %26 = vector.broadcast %25 : vector<4x1xf32> to vector<4x256xf32>
    %27 = arith.mulf %26, %7 : vector<4x256xf32>
    %28 = vector.broadcast %23 : vector<4x1xf32> to vector<4x256xf32>
    %29 = arith.addf %28, %27 : vector<4x256xf32>
    %c0_21 = arith.constant 0 : index
    %c0_22 = arith.constant 0 : index
    %30 = vector.load %arg11[%c0_21, %c0_22] : memref<4x1xf32, #tpu.memory_space<vmem>>, vector<4x1xf32>
    %31 = vector.broadcast %30 : vector<4x1xf32> to vector<4x256xf32>
    %32 = arith.mulf %7, %31 : vector<4x256xf32>
    %cst_23 = arith.constant dense<0.000000e+00> : vector<256xf32>
    %33 = vector.multi_reduction <add>, %32, %cst_23 [0] : vector<4x256xf32> to vector<256xf32>
    %34 = vector.shape_cast %33 : vector<256xf32> to vector<1x256xf32>
    %c0_24 = arith.constant 0 : index
    %c0_25 = arith.constant 0 : index
    %35 = vector.load %arg12[%c0_24, %c0_25] : memref<1x1xf32, #tpu.memory_space<vmem>>, vector<1x1xf32>
    %36 = vector.broadcast %35 : vector<1x1xf32> to vector<1x256xf32>
    %37 = arith.addf %34, %36 : vector<1x256xf32>
    %38 = arith.negf %37 : vector<1x256xf32>
    %39 = math.exp %38 : vector<1x256xf32>
    %cst_26 = arith.constant 1.000000e+00 : f32
    %40 = vector.broadcast %cst_26 : f32 to vector<1x256xf32>
    %41 = arith.addf %40, %39 : vector<1x256xf32>
    %42 = arith.divf %40, %41 : vector<1x256xf32>
    %cst_27 = arith.constant 1.000000e+00 : f32
    %43 = vector.broadcast %cst_27 : f32 to vector<1x256xf32>
    %44 = arith.subf %43, %42 : vector<1x256xf32>
    %45 = vector.broadcast %44 : vector<1x256xf32> to vector<4x256xf32>
    %46 = arith.mulf %45, %21 : vector<4x256xf32>
    %47 = vector.broadcast %42 : vector<1x256xf32> to vector<4x256xf32>
    %48 = arith.mulf %47, %29 : vector<4x256xf32>
    %49 = arith.addf %46, %48 : vector<4x256xf32>
    %c0_28 = arith.constant 0 : index
    %c0_29 = arith.constant 0 : index
    %c0_30 = arith.constant 0 : index
    %50 = vector.load %arg13[%c0_28, %c0_29, %c0_30] : memref<1x4x256xf32, #tpu.memory_space<vmem>>, vector<1x4x256xf32>
    %51 = vector.shape_cast %50 : vector<1x4x256xf32> to vector<4x256xf32>
    %52 = vector.shape_cast %49 : vector<4x256xf32> to vector<1x4x256xf32>
    tpu.vector_store %arg13[%c0_28, %c0_29, %c0_30], %52 {strides = array<i32>} : memref<1x4x256xf32, #tpu.memory_space<vmem>>, vector<1x4x256xf32>,
    return
  }
  func.func @transform_0(%arg0: i32, %arg1: i32) -> (i32, i32, i32) {
    %c0_i32 = arith.constant 0 : i32
    %c0_i32_0 = arith.constant 0 : i32
    return %arg0, %c0_i32, %arg1 : i32, i32, i32
  }
  func.func @transform_1(%arg0: i32, %arg1: i32) -> (i32, i32, i32) {
    %c0_i32 = arith.constant 0 : i32
    %c0_i32_0 = arith.constant 0 : i32
    return %arg0, %c0_i32, %arg1 : i32, i32, i32
  }
  func.func @transform_2(%arg0: i32, %arg1: i32) -> (i32, i32) {
    %c0_i32 = arith.constant 0 : i32
    %c0_i32_0 = arith.constant 0 : i32
    %c0_i32_1 = arith.constant 0 : i32
    return %c0_i32, %c0_i32_0 : i32, i32
  }
  func.func @transform_3(%arg0: i32, %arg1: i32) -> (i32, i32) {
    %c0_i32 = arith.constant 0 : i32
    %c0_i32_0 = arith.constant 0 : i32
    %c0_i32_1 = arith.constant 0 : i32
    return %c0_i32, %c0_i32_0 : i32, i32
  }
  func.func @transform_4(%arg0: i32, %arg1: i32) -> (i32, i32) {
    %c0_i32 = arith.constant 0 : i32
    %c0_i32_0 = arith.constant 0 : i32
    %c0_i32_1 = arith.constant 0 : i32
    return %c0_i32, %c0_i32_0 : i32, i32
  }
  func.func @transform_5(%arg0: i32, %arg1: i32) -> (i32, i32) {
    %c0_i32 = arith.constant 0 : i32
    %c0_i32_0 = arith.constant 0 : i32
    %c0_i32_1 = arith.constant 0 : i32
    return %c0_i32, %c0_i32_0 : i32, i32
  }
  func.func @transform_6(%arg0: i32, %arg1: i32) -> (i32, i32) {
    %c0_i32 = arith.constant 0 : i32
    %c0_i32_0 = arith.constant 0 : i32
    %c0_i32_1 = arith.constant 0 : i32
    return %c0_i32, %c0_i32_0 : i32, i32
  }
  func.func @transform_7(%arg0: i32, %arg1: i32) -> (i32, i32, i32) {
    %c0_i32 = arith.constant 0 : i32
    %c0_i32_0 = arith.constant 0 : i32
    %c0_i32_1 = arith.constant 0 : i32
    return %arg0, %c0_i32, %c0_i32_0 : i32, i32, i32
  }
  func.func @transform_8(%arg0: i32, %arg1: i32) -> (i32, i32, i32) {
    %c0_i32 = arith.constant 0 : i32
    %c0_i32_0 = arith.constant 0 : i32
    %c0_i32_1 = arith.constant 0 : i32
    return %arg0, %c0_i32, %c0_i32_0 : i32, i32, i32
  }
  func.func @transform_9(%arg0: i32, %arg1: i32) -> (i32, i32) {
    %c0_i32 = arith.constant 0 : i32
    %c0_i32_0 = arith.constant 0 : i32
    %c0_i32_1 = arith.constant 0 : i32
    return %c0_i32, %c0_i32_0 : i32, i32
  }
  func.func @transform_10(%arg0: i32, %arg1: i32) -> (i32, i32) {
    %c0_i32 = arith.constant 0 : i32
    %c0_i32_0 = arith.constant 0 : i32
    %c0_i32_1 = arith.constant 0 : i32
    return %c0_i32, %c0_i32_0 : i32, i32
  }
  func.func @transform_11(%arg0: i32, %arg1: i32) -> (i32, i32, i32) {
    %c0_i32 = arith.constant 0 : i32
    %c0_i32_0 = arith.constant 0 : i32
    return %arg0, %c0_i32, %arg1 : i32, i32, i32
  }
}

</mosaic_0001>

<bundles_post_ra>
// kernel: denormalization_forward.2
= control target key start
LH: loop header
LB: loop body
LE: loop exit
PB: predicated region body
PF: predicated region fallthrough
CT: control target
= control target key end

     0   :  { %s330_s9 = smov 0   ;;  %s332_s10 = smov 0   ;;  %s400_s0 = inlined_call_operand.vmem [shape: f32[2,4,256], index: 0, kind: input, shape index: {}]   ;;  %s401_s1 = inlined_call_operand.vmem [shape: f32[4,1], index: 1, kind: output, shape index: {0}]   ;;  %s402_s2 = inlined_call_operand.vmem [shape: f32[4,1], index: 2, kind: output, shape index: {1}]  }
   0x1   :  { %s334_s11 = smov 0  }
   0x2 LB: > { %s25_s12 = sadd.s32 1, %s308_s10  ;;  %p254_p0 = scmp.ge.s32.totalorder %s312_s11, 1  ;;  %s312_s11 = sphi %s334_s11, %s13_s11   ;;  %s308_s10 = sphi %s332_s10, %s404_s10   ;;  %s304_s9 = sphi %s330_s9, %s403_s9  }
   0x3   : > { %p27_p1 = scmp.ge.s32.totalorder %s25_s12, 2  ;;  %p124_p2 = scmp.lt.s32.totalorder %s312_s11, 3 }
   0x5   : > { %s406_s12 = smov (%p27_p1, %s25_s12), 0  ;;  %p125_p3 = pnand %p254_p0, %p124_p2 }
   0x6   : > { %p146_p4 = scmp.lt.s32.totalorder (!%p125_p3), %s304_s9, 1  ;;  %p155_p5 = scmp.eq.s32.totalorder (!%p125_p3), %s304_s9, 0 }
   0x7   : > { %128 = sbr.rel (%p125_p3) target bundleno = 189 (0xbd), region = 24 }
   0xe   : > { %s147_s13 = scalar_select %p146_p4, %s304_s9, 1 }
   0xf   : > { %160 = sbr.rel (!%p155_p5) target bundleno = 22 (0x16), region = 28  ;;  %vm161_vm0 = vcmask (%p155_p5), 3072   ;;  %v314_v0 = vmov (%p155_p5), 0.0  }
  0x10   : > { %s261_s14 = sshll.u32 %s147_s13, 3  ;;  %162 = vst.msk [vmem:[%s401_s1] sm:$0xf] (%p155_p5), %vm161_vm0, %v314_v0  ;;  %163 = vst.msk [vmem:[%s402_s2] sm:$0xf] (%p155_p5), %vm161_vm0, %v314_v0 }
  0x11   : > { %s153_s17 = scalar_lea.vmem %s400_s0, %s261_s14 }
  0x16 PF: > { %v164_v1 = vld [vmem:[%s153_s17] sm:$0xff]  ;;  %vm169_vm1 = vcmask 1043456   ;;  %p190_p6 = scmp.eq.s32.totalorder %s304_s9, 1  ;;  %vm176_vm2 = vcmask 3072  }
  0x17   : > { %v167_v2 = vcombine.high %v164_v1, %v164_v1  ;;  %v170_v3 = vsel %vm169_vm1, %v164_v1, 0.0  ;;  %v179_v4 = vmul.f32 %v164_v1, %v164_v1  ;;  %v165_v11 = vld [vmem:[%s401_s1] sm:$0xf] }
  0x18   : > { %v178_v14 = vld [vmem:[%s402_s2] sm:$0xf] }
  0x19   : > { %v171_v5 = vsel %vm169_vm1, %v167_v2, 0.0  ;;  %v181_v6 = vcombine.high %v179_v4, %v179_v4  ;;  %v183_v7 = vsel %vm169_vm1, %v179_v4, 0.0 }
  0x1a   : > { %v172_v8 = vadd.f32 %v171_v5, %v170_v3 }
  0x1b   : > { %v184_v9 = vsel %vm169_vm1, %v181_v6, 0.0 }
  0x1c   : > { %173 = vadd.xlane.f32.xlu0 %v172_v8  ;;  %v185_v10 = vadd.f32 %v184_v9, %v183_v7 }
  0x20   : > { %186 = vadd.xlane.f32.xlu0 %v185_v10 }
  0xa9   : > { %v174_v12 = vpop.xlane.xlu0 %173 }
  0xaa   : > { %v175_v13 = vadd.f32 %v174_v12, %v165_v11  ;;  %194 = sbr.rel (!%p190_p6) target bundleno = 189 (0xbd), region = 32 }
  0xac   : > { %177 = vst.msk [vmem:[%s401_s1] sm:$0xf] %vm176_vm2, %v175_v13 }
  0xad   : > { %v187_v15 = vpop.xlane.xlu0 %186 }
  0xae   : > { %v188_v16 = vadd.f32 %v187_v15, %v178_v14 }
  0xb0   : > { %189 = vst.msk [vmem:[%s402_s2] sm:$0xf] %vm176_vm2, %v188_v16 }
  0xb3   : > { %v195_v17 = vld [vmem:[%s401_s1] sm:$0xf] }
  0xb4   : > { %v196_v19 = vmul.f32 0.001953125, %v195_v17 }
  0xb6   : > { %199 = vst.msk [vmem:[%s401_s1] sm:$0xf] %vm176_vm2, %v196_v19  ;;  %v200_v21 = vmul.f32 %v196_v19, %v196_v19 }
  0xb7   : > { %v197_v18 = vld [vmem:[%s402_s2] sm:$0xf] }
  0xb8   : > { %v198_v20 = vmul.f32 0.001953125, %v197_v18 }
  0xba   : > { %v201_v22 = vsub.f32 %v198_v20, %v200_v21 }
  0xbc   : > { %202 = vst.msk [vmem:[%s402_s2] sm:$0xf] %vm176_vm2, %v201_v22 }
  0xbd PF: > { %s13_s11 = sadd.s32 1, %s312_s11   ;;  %s403_s9 = smov %s308_s10 }
  0xbe   : > { %p10_p7 = scmp.ge.s32.totalorder %s13_s11, 4   ;;  %s404_s10 = smov %s406_s12 }
  0xc0   :  { %12 = sbr.rel (!%p10_p7) target bundleno = 2 (0x2), region = 66 }

// kernel: denormalization_forward.3
= control target key start
LH: loop header
LB: loop body
LE: loop exit
PB: predicated region body
PF: predicated region fallthrough
CT: control target
= control target key end

     0   :  { %s1008_s19 = smov 0   ;;  %s1010_s20 = smov 0   ;;  %s1073_s0 = inlined_call_operand.vmem [shape: f32[2,4,256], index: 0, kind: input, shape index: {}]   ;;  %s1074_s1 = inlined_call_operand.vmem [shape: f32[2,3,256], index: 1, kind: input, shape index: {}]   ;;  %s1075_s2 = inlined_call_operand.vmem [shape: f32[4,1], index: 2, kind: input, shape index: {}]   ;;  %s1076_s3 = inlined_call_operand.vmem [shape: f32[4,1], index: 3, kind: input, shape index: {}]   ;;  %s1077_s4 = inlined_call_operand.vmem [shape: f32[8,3], index: 4, kind: input, shape index: {}]   ;;  %s1078_s5 = inlined_call_operand.vmem [shape: f32[4,1], index: 5, kind: input, shape index: {}]   ;;  %s1079_s6 = inlined_call_operand.vmem [shape: f32[4,1], index: 6, kind: input, shape index: {}]   ;;  %s1080_s7 = inlined_call_operand.vmem [shape: f32[2,4,1], index: 7, kind: input, shape index: {}]   ;;  %s1081_s8 = inlined_call_operand.vmem [shape: f32[2,4,1], index: 8, kind: input, shape index: {}]   ;;  %s1082_s9 = inlined_call_operand.vmem [shape: f32[4,1], index: 9, kind: input, shape index: {}]   ;;  %s1083_s10 = inlined_call_operand.<no memory space> [shape: f32[1,1], index: 10, kind: input, shape index: {}]   ;;  %s1084_s11 = inlined_call_operand.vmem [shape: f32[2,4,256], index: 11, kind: output, shape index: {}]  }
   0x1   :  { %v16_v0 = vstv %s1083_s10  ;;  %s1012_s21 = smov 0  }
   0x2   :  { %17 = vst [vmem:[#allocation2] sm:$0x1] %v16_v0 }
   0x3 LB: > { %s35_s10 = sadd.s32 1, %s936_s20  ;;  %p861_p0 = scmp.ge.s32.totalorder %s940_s21, 1  ;;  %s940_s21 = sphi %s1012_s21, %s23_s21   ;;  %s936_s20 = sphi %s1010_s20, %s1086_s20   ;;  %s932_s19 = sphi %s1008_s19, %s1085_s19  }
   0x4   : > { %p37_p1 = scmp.ge.s32.totalorder %s35_s10, 2  ;;  %p395_p2 = scmp.lt.s32.totalorder %s940_s21, 3 }
   0x6   : > { %s1088_s10 = smov (%p37_p1, %s35_s10), 0  ;;  %p396_p3 = pnand %p861_p0, %p395_p2 }
   0x7   : > { %v499_v1 = vld [vmem:[%s1075_s2] sm:$0xf] (!%p396_p3)  ;;  %p461_p4 = scmp.lt.s32.totalorder (!%p396_p3), %s932_s19, 1  ;;  %v942_v2 = vmov (!%p396_p3), 0   ;;  %v943_v5 = vmov (!%p396_p3), 0.0   ;;  %vm535_vm0 = vcmask (!%p396_p3), 1042432   ;;  %v507_v16 = vlaneseq (!%p396_p3) }
   0x8   : > { %399 = sbr.rel (%p396_p3) target bundleno = 251 (0xfb), region = 64  ;;  %907 = vset.pattern.permute.xlu0 (!%p396_p3), %v942_v2  ;;  %908 = vset.pattern.permute.xlu1 (!%p396_p3), %v942_v2  ;;  %v659_v3 = vld [vmem:[%s1082_s9] sm:$0xf] (!%p396_p3)  ;;  %vm531_vm1 = vcmask (!%p396_p3), 23552   ;;  %v944_v14 = vmov (!%p396_p3), 839922192  }
   0x9   : > { %502 = vperm.xlu0 (!%p396_p3), %907, %v499_v1   ;;  %662 = vperm.xlu1 (!%p396_p3), %908, %v659_v3   ;;  %v513_v4 = vld [vmem:[%s1076_s3] sm:$0xf] (!%p396_p3)  ;;  %v505_v15 = vunpack.c.l.s4 (!%p396_p3), %v944_v14  ;;  %v508_v18 = vshrl.u32 (!%p396_p3), %v507_v16, 7  ;;  %vm676_vm2 = vcmask (!%p396_p3), 1043456  }
   0xa   : > { %604 = vmatprep.mubr.f32.mxu0 (!%p396_p3), %v943_v5  ;;  %v691_v6 = vld [vmem:[#allocation2] sm:$0x1] (!%p396_p3) }
   0xb   : > { %v619_v9 = vld [vmem:[%s1079_s6] sm:$0xf] (!%p396_p3)  ;;  %v506_v17 = vunpack.c.0.s8 (!%p396_p3), %v505_v15  ;;  %v699_v41 = vsub.s32 (!%p396_p3), 0, %v508_v18 }
   0xc   : > { %v528_v10 = vld [vmem:[%s1077_s4] sm:$0xff] (!%p396_p3) }
   0xd   : > { %516 = vperm.xlu0 (!%p396_p3), %907, %v513_v4   ;;  %694 = vperm.xlu1 (!%p396_p3), %908, %v691_v6   ;;  %v611_v11 = vld [vmem:[%s1078_s5] sm:$0xf] (!%p396_p3)  ;;  %v509_v20 = vsub.s32 (!%p396_p3), %v506_v17, %v508_v18 }
   0xf   : > { %s1090_s19 = smov (!%p461_p4, %s932_s19), 1 }
  0x10   : > { %s1035_s28 = sshll.u32 %s1090_s19, 3  ;;  %s866_s13 = sshll.u32 %s1090_s19, 2 }
  0x11   : > { %s478_s12 = scalar_lea.vmem %s1074_s1, %s1035_s28  ;;  %s487_s24 = scalar_lea.vmem %s1081_s8, %s866_s13  ;;  %622 = vperm.xlu0 %907, %v619_v9   ;;  %614 = vperm.xlu1 %908, %v611_v11  }
  0x12   : > { %v527_v7 = vld [vmem:[%s478_s12] sm:$0x77]  ;;  %s483_s27 = scalar_lea.vmem %s1080_s7, %s866_s13  ;;  %s468_s12 = scalar_lea.vmem %s1073_s0, %s1035_s28 }
  0x13   : > { %v530_v8 = vcombine.high %v527_v7, %v527_v7  ;;  %v642_v12 = vld [vmem:[%s487_s24] sm:$0xf]  ;;  %s496_s15 = scalar_lea.vmem %s1084_s11, %s1035_s28 }
  0x14   : > { %v641_v13 = vld [vmem:[%s483_s27] sm:$0xf] }
  0x15   : > { %870 = vmatprep.subr.msk.mxu0 %vm535_vm0, %v530_v8  ;;  %645 = vperm.xlu0 %907, %v642_v12   ;;  %v498_v22 = vld [vmem:[%s468_s12] sm:$0xff] }
  0x16   : > { %871 = vmatpush1.msk.msra.mxu0 %vm535_vm0, %v527_v7  ;;  %654 = vperm.xlu1 %908, %v641_v13  }
  0x17   : > { %872 = vmatmul.mubr.msk.f32.vlgmr.msra.gmra.mrb[0].mxu0 %vm531_vm1, %v528_v10 }
  0x88   : > { %v503_v19 = vpop.permute.xlu0 %502  ;;  %v663_v26 = vpop.permute.xlu1 %662 }
  0x89   : > { %v510_v21 = vrot.slane %v503_v19, %v509_v20  ;;  %v670_v28 = vrot.slane %v663_v26, %v509_v20 }
  0x8b   : > { %v512_v24 = vmul.f32 %v510_v21, %v498_v22 }
  0x8c   : > { %v517_v23 = vpop.permute.xlu0 %516  ;;  %v695_v43 = vpop.permute.xlu1 %694 }
  0x8d   : > { %v524_v25 = vrot.slane %v517_v23, %v509_v20  ;;  %v700_v46 = vrot.slane %v695_v43, %v699_v41 }
  0x8f   : > { %v526_v27 = vadd.f32 %v524_v25, %v512_v24 }
  0x90   : > { %v623_v55 = vpop.permute.xlu0 %622  ;;  %v615_v57 = vpop.permute.xlu1 %614 }
  0x91   : > { %v672_v29 = vmul.f32 %v670_v28, %v526_v27  ;;  %v624_v59 = vrot.slane %v623_v55, 4  ;;  %v648_v60 = vcombine.high %v526_v27, %v526_v27  ;;  %v629_v0 = vcombine.low %v526_v27, %v526_v27 }
  0x93   : > { %v674_v30 = vcombine.high %v672_v29, %v672_v29  ;;  %v677_v31 = vsel %vm676_vm2, %v672_v29, 0.0 }
  0x94   : > { %v678_v33 = vrot.slane %v677_v31, 4  ;;  %v646_v58 = vpop.permute.xlu0 %645 }
  0x95   : > { %v684_v32 = vsel %vm676_vm2, %v674_v30, 0.0  ;;  %v650_v62 = vmul.f32 %v646_v58, %v526_v27  ;;  %v655_v2 = vpop.permute.xlu1 %654  ;;  %v651_v5 = vmul.f32 %v648_v60, %v646_v58 }
  0x96   : > { %v685_v34 = vrot.slane %v684_v32, 4  ;;  %v679_v35 = vadd.f32 %v678_v33, %v677_v31 }
  0x97   : > { %v657_v7 = vadd.f32 %v655_v2, %v650_v62  ;;  %v658_v16 = vadd.f32 %v655_v2, %v651_v5 }
  0x98   : > { %v686_v36 = vadd.f32 %v685_v34, %v684_v32  ;;  %v680_v37 = vrot.slane %v679_v35, 2 }
  0x9a   : > { %v687_v38 = vrot.slane %v686_v36, 2  ;;  %v681_v39 = vadd.f32 %v680_v37, %v679_v35 }
  0x9c   : > { %v688_v40 = vadd.f32 %v687_v38, %v686_v36  ;;  %v682_v42 = vrot.slane %v681_v39, 1 }
  0x9e   : > { %v689_v44 = vrot.slane %v688_v40, 1  ;;  %v683_v45 = vadd.f32 %v682_v42, %v681_v39 }
  0xa0   : > { %v690_v47 = vadd.f32 %v689_v44, %v688_v40  ;;  %v701_v48 = vadd.f32 %v700_v46, %v683_v45 }
  0xa2   : > { %v702_v49 = vadd.f32 %v700_v46, %v690_v47  ;;  %v873_v50 = vmul.f32 -1.442695, %v701_v48 }
  0xa4   : > { %v874_v51 = vmul.f32 -1.442695, %v702_v49  ;;  %910 = vpow2.f32 %v873_v50 }
  0xa6   : > { %912 = vpow2.f32 %v874_v51 }
  0xae   : > { %v911_v52 = vpop.eup %910 }
  0xaf   : > { %v709_v54 = vadd.f32 1.0, %v911_v52 }
  0xb0   : > { %v913_v53 = vpop.eup %912 }
  0xb1   : > { %v710_v56 = vadd.f32 1.0, %v913_v53  ;;  %914 = vrcp.f32 %v709_v54 }
  0xb3   : > { %916 = vrcp.f32 %v710_v56 }
  0xbb   : > { %v915_v10 = vpop.eup %914 }
  0xbc   : > { %v715_v15 = vsub.f32 1.0, %v915_v10  ;;  %v719_v19 = vmul.f32 %v915_v10, %v657_v7 }
  0xbd   : > { %v917_v13 = vpop.eup %916 }
  0xbe   : > { %v716_v18 = vsub.f32 1.0, %v917_v13  ;;  %v720_v21 = vmul.f32 %v917_v13, %v658_v16 }
  0xea   : > { %v606_v61 = vpop.f32.mrb[0].mxu0 }
  0xeb   : > { %v626_v63 = vadd.f32 %v624_v59, %v606_v61  ;;  %v608_v1 = vpop.f32.mrb[1].mxu0  ;;  %v617_v8 = vadd.f32 %v615_v57, %v606_v61 }
  0xec   : > { %v627_v3 = vadd.f32 %v624_v59, %v608_v1  ;;  %v618_v11 = vadd.f32 %v615_v57, %v608_v1 }
  0xed   : > { %v631_v4 = vmul.f32 %v629_v0, %v626_v63 }
  0xee   : > { %v632_v6 = vmul.f32 %v627_v3, %v526_v27 }
  0xef   : > { %v635_v9 = vrot.slane %v631_v4, 4 }
  0xf0   : > { %v636_v12 = vrot.slane %v632_v6, 4 }
  0xf1   : > { %v639_v14 = vadd.f32 %v635_v9, %v617_v8 }
  0xf2   : > { %v640_v17 = vadd.f32 %v636_v12, %v618_v11 }
  0xf3   : > { %v717_v20 = vmul.f32 %v715_v15, %v639_v14 }
  0xf4   : > { %v718_v22 = vmul.f32 %v716_v18, %v640_v17 }
  0xf5   : > { %v721_v23 = vadd.f32 %v719_v19, %v717_v20 }
  0xf6   : > { %v722_v24 = vadd.f32 %v720_v21, %v718_v22 }
  0xf8   : > { %v725_v25 = vcombine.low %v721_v23, %v722_v24 }
  0xfa   : > { %727 = vst [vmem:[%s496_s15] sm:$0xff] %v725_v25 }
  0xfb PF: > { %s23_s21 = sadd.s32 1, %s940_s21   ;;  %s1085_s19 = smov %s936_s20 }
  0xfc   : > { %p20_p5 = scmp.ge.s32.totalorder %s23_s21, 4   ;;  %s1086_s20 = smov %s1088_s10 }
  0xfe   :  { %22 = sbr.rel (!%p20_p5) target bundleno = 3 (0x3), region = 103 }

</bundles_post_ra>
